<compile_context>
chip_gen: v6e
topology: v6e:2x2x1
jax: 0.10.0
libtpu: 0.0.40
codegen_flags: <defaults>
</compile_context>

<pallas_src>
import functools

import jax
import jax.numpy as jnp
from jax.experimental import pallas as pl
from jax.experimental.pallas import tpu as pltpu


def _round_up(x: int, m: int) -> int:
    return ((x + m - 1) // m) * m


def _largest_aligned_divisor(n: int, cap: int, gran: int) -> int:
    """Largest multiple of `gran` that divides `n` and is <= cap.

    `n` is assumed to be a multiple of `gran`, so `gran` itself always works.
    """
    if n <= cap:
        return n
    c = max((cap // gran) * gran, gran)
    while c > gran and n % c != 0:
        c -= gran
    return c


def _vmem_capacity_bytes() -> int:
    try:
        return int(pltpu.get_tpu_info().vmem_capacity_bytes)
    except Exception:
        return 64 << 20  # conservative (v7x-sized) if the query is unavailable


def _pick_tiles(Bp: int, Dp: int, Fp: int, itemsize: int):
    """Generation-aware tile selection. Returns (tm, tn, tk, vmem_limit_bytes)."""
    vmem_cap = _vmem_capacity_bytes()
    small_vmem = vmem_cap <= (64 << 20)  # v7x-class parts
    if small_vmem:
        # ~11 MiB double-buffered f32 footprint; leave headroom under 64 MiB.
        cap_m, cap_n, cap_k = 512, 512, 1024
        vmem_limit = 40 << 20
    else:
        # v5e / v6e: 128 MiB physical VMEM; ~30 MiB double-buffered footprint.
        cap_m, cap_n, cap_k = 512, 1024, 2048
        vmem_limit = 64 << 20

    sub = 16 if itemsize == 2 else 8
    if itemsize == 2:
        cap_k *= 2  # bf16 tiles are half the bytes -> deeper K tiles

    tm = _largest_aligned_divisor(Bp, cap_m, sub)
    tk = _largest_aligned_divisor(Dp, cap_k, 128)
    tn = _largest_aligned_divisor(Fp, cap_n, 128)

    # v7x has 2 TensorCores: make sure at least one "parallel" grid axis has
    # >= 2 blocks.  Shrink tn (not tm) so the X-reload factor stays at 1.
    if (Bp // tm == 1) and (Fp // tn == 1) and Fp >= 256:
        tn = _largest_aligned_divisor(Fp, Fp // 2, 128)

    return tm, tn, tk, vmem_limit


def _fe_kernel_single_k(x_ref, w_ref, b_ref, o_ref):
    # Whole reduction in one tile: no scratch, no pl.when, direct MXU + bias.
    acc = jnp.dot(x_ref[...], w_ref[...], preferred_element_type=jnp.float32)
    o_ref[...] = (acc + b_ref[...].astype(jnp.float32)).astype(o_ref.dtype)


def _fe_kernel_multi_k(x_ref, w_ref, b_ref, o_ref, acc_ref):
    # x_ref: (tm, tk)  w_ref: (tk, tn)  b_ref: (1, tn)
    # o_ref: (tm, tn)  acc_ref: (tm, tn) f32 scratch, resident across K steps.
    k = pl.program_id(2)

    @pl.when(k == 0)
    def _():
        # Fold the bias into the accumulator init (saves a VPU add in the epilogue).
        acc_ref[...] = jnp.broadcast_to(
            b_ref[...].astype(jnp.float32), acc_ref.shape
        )

    acc_ref[...] += jnp.dot(
        x_ref[...], w_ref[...], preferred_element_type=jnp.float32
    )

    @pl.when(k == pl.num_programs(2) - 1)
    def _():
        o_ref[...] = acc_ref[...].astype(o_ref.dtype)


@functools.partial(
    jax.jit, static_argnames=("out_features", "force_pallas", "_tile_override")
)
def feature_extractor_forward(
    case, weight, bias, *, out_features=None, force_pallas=False, _tile_override=None
):
    """Pallas forward: features = case @ weight + bias.

    case:   (B, D)
    weight: (Dw, Fw) with Dw >= D; may already be zero-padded to 128-multiples
            (as produced by PallasFeatureExtractor.__init__).
    bias:   (Fw,) or (1, Fw); may already be padded.
    out_features: logical number of output features (defaults to Fw).
    """
    B, D = case.shape
    Dw, Fw = weight.shape
    assert Dw >= D, "in_dim mismatch"
    out_features = Fw if out_features is None else out_features
    out_dtype = case.dtype
    itemsize = case.dtype.itemsize

    sub = 16 if itemsize == 2 else 8
    Bp = _round_up(B, sub)
    Dp = _round_up(Dw, 128)
    Fp = _round_up(Fw, 128)

    # Small-problem fallback: pad/slice + pallas launch overhead dominates, and
    # XLA's fused matmul is strictly faster there.
    if not force_pallas and (Bp * Dp * Fp) < (1 << 20):
        out = jnp.dot(case, weight[:D, :], preferred_element_type=jnp.float32)
        out = out + bias.reshape(1, -1).astype(jnp.float32)
        return out[:, :out_features].astype(out_dtype)

    # Pad only to hardware granularity; guarded so already-aligned inputs
    # (e.g. pre-padded weights from the class) skip the HBM copy entirely.
    x = case
    if (Bp != B) or (Dp != D):
        # K (reduction) padding must be explicit zeros — exact for matmul.
        x = jnp.pad(x, ((0, Bp - B), (0, Dp - D)))
    w = weight
    if (Dp != Dw) or (Fp != Fw):
        w = jnp.pad(w, ((0, Dp - Dw), (0, Fp - Fw)))
    b = bias.reshape(1, -1).astype(jnp.float32)
    if b.shape[1] != Fp:
        b = jnp.pad(b, ((0, 0), (0, Fp - b.shape[1])))

    if _tile_override is not None:
        tm, tn, tk = _tile_override
        vmem_limit = 32 << 20
    else:
        tm, tn, tk, vmem_limit = _pick_tiles(Bp, Dp, Fp, itemsize)

    grid_m, grid_n, n_k = Bp // tm, Fp // tn, Dp // tk

    cost = pl.CostEstimate(
        flops=2 * Bp * Dp * Fp,
        bytes_accessed=itemsize * (Bp * Dp + Dp * Fp)
        + out_dtype.itemsize * Bp * Fp
        + 4 * Fp,
        transcendentals=0,
    )

    if n_k == 1:
        out_p = pl.pallas_call(
            _fe_kernel_single_k,
            out_shape=jax.ShapeDtypeStruct((Bp, Fp), out_dtype),
            grid=(grid_m, grid_n),
            in_specs=[
                pl.BlockSpec((tm, tk), lambda i, j: (i, 0)),
                pl.BlockSpec((tk, tn), lambda i, j: (0, j)),
                pl.BlockSpec((1, tn), lambda i, j: (0, j)),
            ],
            out_specs=pl.BlockSpec((tm, tn), lambda i, j: (i, j)),
            compiler_params=pltpu.CompilerParams(
                dimension_semantics=("parallel", "parallel"),
                vmem_limit_bytes=vmem_limit,
            ),
            cost_estimate=cost,
        )(x, w, b)
    else:
        out_p = pl.pallas_call(
            _fe_kernel_multi_k,
            out_shape=jax.ShapeDtypeStruct((Bp, Fp), out_dtype),
            grid=(grid_m, grid_n, n_k),
            in_specs=[
                pl.BlockSpec((tm, tk), lambda i, j, k: (i, k)),
                pl.BlockSpec((tk, tn), lambda i, j, k: (k, j)),
                pl.BlockSpec((1, tn), lambda i, j, k: (0, j)),
            ],
            out_specs=pl.BlockSpec((tm, tn), lambda i, j, k: (i, j)),
            scratch_shapes=[pltpu.VMEM((tm, tn), jnp.float32)],
            compiler_params=pltpu.CompilerParams(
                dimension_semantics=("parallel", "parallel", "arbitrary"),
                vmem_limit_bytes=vmem_limit,
            ),
            cost_estimate=cost,
        )(x, w, b)

    if (Bp != B) or (Fp != out_features):
        out_p = out_p[:B, :out_features]
    return out_p


class PallasFeatureExtractor:
    """Concrete FeatureExtractor: linear projection to `no_features`."""

    def __init__(self, in_dim, no_features, key, compute_dtype=None):
        self.no_features = no_features
        self.in_dim = in_dim
        self._compute_dtype = compute_dtype

        kw, kb = jax.random.split(key)
        # Deterministic synthetic parameter init (matches nn.Linear shapes).
        weight = jax.random.normal(kw, (in_dim, no_features), dtype=jnp.float32)
        weight = weight / jnp.sqrt(jnp.float32(in_dim))
        bias = jax.random.normal(kb, (no_features,), dtype=jnp.float32) * 0.01
        self.weight = weight  # logical (unpadded) params, for reference / plotting
        self.bias = bias

        # Hoist lane-granularity padding and any low-precision cast out of the
        # per-call forward path: pay the HBM copy exactly once, here.
        Dp = _round_up(in_dim, 128)
        Fp = _round_up(no_features, 128)
        w_p = jnp.pad(weight, ((0, Dp - in_dim), (0, Fp - no_features)))
        if compute_dtype is not None:
            w_p = w_p.astype(compute_dtype)
        self._weight_padded = w_p
        self._bias_padded = (
            jnp.pad(bias, (0, Fp - no_features)).astype(jnp.float32).reshape(1, Fp)
        )

    def forward(self, case, force_pallas=False):
        if self._compute_dtype is not None:
            case = case.astype(self._compute_dtype)
        return feature_extractor_forward(
            case,
            self._weight_padded,
            self._bias_padded,
            out_features=self.no_features,
            force_pallas=force_pallas,
        )

    def get_output_features(self):
        return self.no_features

    def plot_parameters(self):
        # TODO(synk): plotting has no Pallas equivalent; return params instead.
        return {"weight": self.weight, "bias": self.bias}


if __name__ == "__main__":
    key = jax.random.PRNGKey(0)
    k_case, k_params, k_case2, k_w2 = jax.random.split(key, 4)

    batch, in_dim, no_features = 8, 32, 16
    case = jax.random.normal(k_case, (batch, in_dim), dtype=jnp.float32)
    extractor = PallasFeatureExtractor(in_dim, no_features, k_params)
    ref = case @ extractor.weight + extractor.bias

    # 1) Pallas kernel path (single-K-step specialization), forced at small shape.
    out = jax.block_until_ready(extractor.forward(case, force_pallas=True))
    assert out.shape == (batch, no_features)
    assert jnp.allclose(out, ref, atol=1e-5, rtol=1e-5)

    # 2) Default path at this tiny shape takes the XLA fallback — must match too.
    out_fb = jax.block_until_ready(extractor.forward(case))
    assert jnp.allclose(out_fb, ref, atol=1e-5, rtol=1e-5)

    # 3) Multi-K accumulator kernel, exercised via a tile override so the
    #    reduction axis spans several grid steps at a small test shape.
    b2, d2, f2 = 16, 256, 128
    case2 = jax.random.normal(k_case2, (b2, d2), dtype=jnp.float32)
    w2 = jax.random.normal(k_w2, (d2, f2), dtype=jnp.float32) / jnp.sqrt(
        jnp.float32(d2)
    )
    bias2 = jax.random.normal(k_w2, (f2,), dtype=jnp.float32) * 0.01
    out2 = feature_extractor_forward(
        case2, w2, bias2, force_pallas=True, _tile_override=(8, 128, 128)
    )
    out2 = jax.block_until_ready(out2)
    ref2 = case2 @ w2 + bias2
    assert jnp.allclose(out2, ref2, atol=1e-4, rtol=1e-4)

    print("KERNEL_OK")
</pallas_src>

<mosaic_0001>
module attributes {stable_mosaic.version = 11 : i64} {
  func.func @_fe_kernel_single_k(%arg0: i32, %arg1: i32, %arg2: memref<8x128xf32, #tpu.memory_space<vmem>>, %arg3: memref<128x128xf32, #tpu.memory_space<vmem>>, %arg4: memref<1x128xf32, #tpu.memory_space<vmem>>, %arg5: memref<8x128xf32, #tpu.memory_space<vmem>>) attributes {dimension_semantics = [#tpu.dimension_semantics<parallel>, #tpu.dimension_semantics<parallel>], iteration_bounds = array<i64: 1, 1>, scalar_prefetch = 0 : i64, scratch_operands = 0 : i64, tpu.core_type = #tpu.core_type<tc>, window_params = [{transform_indices = @transform_0, window_bounds = array<i64: 8, 128>}, {transform_indices = @transform_1, window_bounds = array<i64: 128, 128>}, {transform_indices = @transform_2, window_bounds = array<i64: 1, 128>}, {transform_indices = @transform_3, window_bounds = array<i64: 8, 128>}]} {
    %c0 = arith.constant 0 : index
    %c0_0 = arith.constant 0 : index
    %0 = vector.load %arg2[%c0, %c0_0] : memref<8x128xf32, #tpu.memory_space<vmem>>, vector<8x128xf32>
    %c0_1 = arith.constant 0 : index
    %c0_2 = arith.constant 0 : index
    %1 = vector.load %arg3[%c0_1, %c0_2] : memref<128x128xf32, #tpu.memory_space<vmem>>, vector<128x128xf32>
    %cst = arith.constant dense<0.000000e+00> : vector<8x128xf32>
    %2 = tpu.matmul %0, %1, %cst {dimension_numbers = #tpu.dot_dimension_numbers<[1], [0], [0], [1], [0, 0, 1, 1], [], []>} : vector<8x128xf32>, vector<128x128xf32>, vector<8x128xf32> -> vector<8x128xf32>
    %c0_3 = arith.constant 0 : index
    %c0_4 = arith.constant 0 : index
    %3 = vector.load %arg4[%c0_3, %c0_4] : memref<1x128xf32, #tpu.memory_space<vmem>>, vector<1x128xf32>
    %4 = vector.broadcast %3 : vector<1x128xf32> to vector<8x128xf32>
    %5 = arith.addf %2, %4 : vector<8x128xf32>
    %c0_5 = arith.constant 0 : index
    %c0_6 = arith.constant 0 : index
    %6 = vector.load %arg5[%c0_5, %c0_6] : memref<8x128xf32, #tpu.memory_space<vmem>>, vector<8x128xf32>
    tpu.vector_store %arg5[%c0_5, %c0_6], %5 {strides = array<i32>} : memref<8x128xf32, #tpu.memory_space<vmem>>, vector<8x128xf32>,
    return
  }
  func.func @transform_0(%arg0: i32, %arg1: i32) -> (i32, i32) {
    %c0_i32 = arith.constant 0 : i32
    %c0_i32_0 = arith.constant 0 : i32
    return %arg0, %c0_i32 : i32, i32
  }
  func.func @transform_1(%arg0: i32, %arg1: i32) -> (i32, i32) {
    %c0_i32 = arith.constant 0 : i32
    %c0_i32_0 = arith.constant 0 : i32
    return %c0_i32, %arg1 : i32, i32
  }
  func.func @transform_2(%arg0: i32, %arg1: i32) -> (i32, i32) {
    %c0_i32 = arith.constant 0 : i32
    %c0_i32_0 = arith.constant 0 : i32
    return %c0_i32, %arg1 : i32, i32
  }
  func.func @transform_3(%arg0: i32, %arg1: i32) -> (i32, i32) {
    %c0_i32 = arith.constant 0 : i32
    return %arg0, %arg1 : i32, i32
  }
}

</mosaic_0001>

<bundles_post_ra>
// kernel: feature_extractor_forward.1
= control target key start
LH: loop header
LB: loop body
LE: loop exit
PB: predicated region body
PF: predicated region fallthrough
CT: control target
= control target key end

     0   :  { %8 = vsyncpa [#allocation3], 0  ;;  %s280_s0 = inlined_call_operand.vmem [shape: f32[8,128], index: 0, kind: input, shape index: {}]   ;;  %s281_s1 = inlined_call_operand.hbm [shape: f32[128,128], index: 1, kind: input, shape index: {}]   ;;  %s282_s2 = inlined_call_operand.vmem [shape: f32[1,128], index: 2, kind: input, shape index: {}]   ;;  %s283_s3 = inlined_call_operand.hbm [shape: f32[8,128], index: 3, kind: output, shape index: {}]  }
   0x1   :  { %9 = vsyncpa [#allocation4], 0  ;;  %s242_s12 = smov [#allocation2]  }
   0x2   :  { %s17_s13 = sshll.u32 %s242_s12, 4  ;;  %s18_s13 = int_to_ptr.vmem [resolvable:$true] %s17_s13 }
   0x3   :  { %s206_s14 = scalar_lea.vmem %s18_s13, 2048  ;;  %p211_p1 = scmp.lt.s32.totalorder %s18_s13, %s18_s13 }
   0x4   :  { %p207_p0 = scmp.ne.s32.totalorder %s18_s13, %s206_s14  ;;  %p212_p2 = scmp.lt.s32.totalorder %s206_s14, %s206_s14 }
   0x6   :  { %p213_p3 = por %p212_p2, %p211_p1 }
   0x8   :  { %p214_p4 = pnand %p213_p3, %p207_p0 }
   0xa   :  { %217 = shalt.err (!%p214_p4)
}
   0xb   :  { %s243_s15 = smov 128   ;;  %s244_s16 = smov 8  }
   0xc   :  { %23 = dma.hbm_to_vmem [thread:$0]  %s281_s1, 2048, %s18_s13, [#allocation3], %s243_s15, %s243_s15, %s244_s16  }
   0xd   :  { %238 = dma.done.wait [#allocation3], 2048  }
   0xe   :  { %239 = vsyncadd [#allocation3], 4294965248  ;;  %v245_v0 = vmov 0.0   ;;  %vm246_vm0 = vmmov 0   ;;  %v45_v1 = vld [vmem:[#allocation2 + $0x78] sm:$0xff]  ;;  %v44_v2 = vld [vmem:[#allocation2 + $0x70] sm:$0xff] }
   0xf   :  { %157 = vmatprep.subr.mxu0 %v245_v0  ;;  %189 = vmatprep.mubr.msk.f32.mxu0 %vm246_vm0, %v245_v0  ;;  %v43_v3 = vld [vmem:[#allocation2 + $0x68] sm:$0xff]  ;;  %v42_v4 = vld [vmem:[#allocation2 + $0x60] sm:$0xff]  ;;  %v41_v5 = vld [vmem:[#allocation2 + $0x58] sm:$0xff]  ;;  %s247_s22 = smov [#allocation5]  }
  0x10   :  { %158 = vmatpush3.msra.mxu0 %v45_v1  ;;  %v40_v6 = vld [vmem:[#allocation2 + $0x50] sm:$0xff]  ;;  %v39_v7 = vld [vmem:[#allocation2 + $0x48] sm:$0xff]  ;;  %v38_v8 = vld [vmem:[#allocation2 + $0x40] sm:$0xff]  ;;  %s130_s23 = sshll.u32 %s247_s22, 4  ;;  %s131_s23 = int_to_ptr.vmem [resolvable:$true] %s130_s23 }
  0x11   :  { %159 = vmatprep.subr.mxu0 %v245_v0  ;;  %v37_v9 = vld [vmem:[#allocation2 + $0x38] sm:$0xff]  ;;  %v36_v10 = vld [vmem:[#allocation2 + $0x30] sm:$0xff]  ;;  %v35_v11 = vld [vmem:[#allocation2 + $0x28] sm:$0xff]  ;;  %s218_s24 = scalar_lea.vmem %s131_s23, 128  ;;  %p223_p6 = scmp.lt.s32.totalorder %s131_s23, %s131_s23 }
  0x12   :  { %160 = vmatpush3.msra.mxu0 %v44_v2  ;;  %v34_v12 = vld [vmem:[#allocation2 + $0x20] sm:$0xff]  ;;  %v33_v13 = vld [vmem:[#allocation2 + $0x18] sm:$0xff]  ;;  %v32_v14 = vld [vmem:[#allocation2 + $0x10] sm:$0xff]  ;;  %p219_p5 = scmp.ne.s32.totalorder %s131_s23, %s218_s24  ;;  %p224_p7 = scmp.lt.s32.totalorder %s218_s24, %s218_s24 }
  0x13   :  { %161 = vmatprep.subr.mxu0 %v245_v0  ;;  %v31_v15 = vld [vmem:[#allocation2 + $0x8] sm:$0xff]  ;;  %v30_v16 = vld [vmem:[#allocation2] sm:$0xff] }
  0x14   :  { %162 = vmatpush3.msra.mxu0 %v43_v3  ;;  %v29_v17 = vld [vmem:[%s280_s0] sm:$0xff]  ;;  %p225_p8 = por %p224_p7, %p223_p6 }
  0x15   :  { %163 = vmatprep.subr.mxu0 %v245_v0  ;;  %v139_v18 = vld [vmem:[%s282_s2] ss:$0 sm:$0xff] }
  0x16   :  { %164 = vmatpush3.msra.mxu0 %v42_v4  ;;  %p226_p9 = pnand %p225_p8, %p219_p5 }
  0x17   :  { %165 = vmatprep.subr.mxu0 %v245_v0 }
  0x18   :  { %166 = vmatpush3.msra.mxu0 %v41_v5 }
  0x19   :  { %167 = vmatprep.subr.mxu0 %v245_v0 }
  0x1a   :  { %168 = vmatpush3.msra.mxu0 %v40_v6 }
  0x1b   :  { %169 = vmatprep.subr.mxu0 %v245_v0 }
  0x1c   :  { %170 = vmatpush3.msra.mxu0 %v39_v7 }
  0x1d   :  { %171 = vmatprep.subr.mxu0 %v245_v0 }
  0x1e   :  { %172 = vmatpush3.msra.mxu0 %v38_v8 }
  0x1f   :  { %173 = vmatprep.subr.mxu0 %v245_v0 }
  0x20   :  { %174 = vmatpush3.msra.mxu0 %v37_v9 }
  0x21   :  { %175 = vmatprep.subr.mxu0 %v245_v0 }
  0x22   :  { %176 = vmatpush3.msra.mxu0 %v36_v10 }
  0x23   :  { %177 = vmatprep.subr.mxu0 %v245_v0 }
  0x24   :  { %178 = vmatpush3.msra.mxu0 %v35_v11 }
  0x25   :  { %179 = vmatprep.subr.mxu0 %v245_v0 }
  0x26   :  { %180 = vmatpush3.msra.mxu0 %v34_v12 }
  0x27   :  { %181 = vmatprep.subr.mxu0 %v245_v0 }
  0x28   :  { %182 = vmatpush3.msra.mxu0 %v33_v13 }
  0x29   :  { %183 = vmatprep.subr.mxu0 %v245_v0 }
  0x2a   :  { %184 = vmatpush3.msra.mxu0 %v32_v14 }
  0x2b   :  { %185 = vmatprep.subr.mxu0 %v245_v0 }
  0x2c   :  { %186 = vmatpush3.msra.mxu0 %v31_v15 }
  0x2d   :  { %187 = vmatprep.subr.mxu0 %v245_v0 }
  0x2e   :  { %188 = vmatpush3.msra.mxu0 %v30_v16 }
  0x2f   :  { %190 = vmatmul.mubr.f32.vlgmr.msra.gmra.mxu0 %v29_v17 }
  0xef   :  { %v119_v19 = vpop.f32.mrf.mxu0 }
  0xf0   :  { %v120_v20 = vadd.f32 %v139_v18, %v119_v19 }
  0xf1   :  { %v191_v21 = vpop.f32.mrf.mxu0 }
  0xf2   :  { %123 = vst [vmem:[#allocation5] sm:$0xff] %v120_v20 }
  0xf3   :  { %229 = shalt.err (!%p226_p9)
}
  0xf4   :  { %133 = dma.vmem_to_hbm [thread:$0]  %s131_s23, 128, %s283_s3, [#allocation4]  }
  0xf5   :  { %240 = dma.done.wait [#allocation4], 128  }
  0xf6   :  { %241 = vsyncadd [#allocation4], 4294967168 }
  0xf7   :  { %137 = vsyncpa [#allocation3], 1 }
  0xf8   :  { %138 = vsyncpa [#allocation4], 1 }

</bundles_post_ra>
